<compile_context>
chip_gen: v7x
topology: tpu7x:2x2x1
jax: 0.10.0
libtpu: 0.0.40
codegen_flags: <defaults>
</compile_context>

<pallas_src>
import numpy as np
import jax
import jax.numpy as jnp
from jax.experimental import pallas as pl
from jax.experimental.pallas import tpu as pltpu

# ----------------------------- configuration -------------------------------
BOARD_H, BOARD_W = 6, 7
C_IN = 2
C_CONV1 = 8
C_CONV2 = 8
FC_HIDDEN = 32
HEAD1_OUT = 7                                   # policy / Q-vals / advantages
HEAD2_OUT = 1                                   # state value
HEAD_TOT = HEAD1_OUT + HEAD2_OUT                # 8 (fused head matmul width)

IN_FLAT = BOARD_H * BOARD_W * C_IN              # 84   (h, w, c) flattened input per sample
CONV1_FLAT = BOARD_H * BOARD_W * C_CONV1        # 336
CONV2_FLAT = BOARD_H * BOARD_W * C_CONV2        # 336

TILE_B = 256                                    # samples per grid step (rows of the matmuls)


# ------------------------------ fused Pallas kernel -------------------------
def _fused_kernel(x_ref, m1_ref, b1_ref, m2_ref, b2_ref,
                  wfc_ref, bfc_ref, wh_ref, bh_ref, o_ref):
    """Whole forward pass for one batch tile: 4 matmuls, 3 ReLUs, tanh on the value lane."""
    x = x_ref[...]                                                           # (tb, 84)
    z1 = jnp.maximum(
        jnp.dot(x, m1_ref[...], preferred_element_type=jnp.float32) + b1_ref[...], 0.0)
    z2 = jnp.maximum(
        jnp.dot(z1, m2_ref[...], preferred_element_type=jnp.float32) + b2_ref[...], 0.0)
    h = jnp.maximum(
        jnp.dot(z2, wfc_ref[...], preferred_element_type=jnp.float32) + bfc_ref[...], 0.0)
    z = jnp.dot(h, wh_ref[...], preferred_element_type=jnp.float32) + bh_ref[...]   # (tb, 8)
    col = jax.lax.broadcasted_iota(jnp.int32, z.shape, 1)                    # hoisted, once/tile
    # tanh only on the second-head (value) column; single lane-dense store.
    o_ref[...] = jnp.where(col >= HEAD1_OUT, jnp.tanh(z), z)


def _round_up(x, m):
    return ((x + m - 1) // m) * m


def _fused_forward(x_flat, kp, n):
    tb = min(TILE_B, _round_up(n, 8))
    n_pad = _round_up(n, tb)
    if n_pad != n:
        x_flat = jnp.pad(x_flat, ((0, n_pad - n), (0, 0)))

    const = lambda i: (0, 0)          # weights: resident across the batch grid
    out = pl.pallas_call(
        _fused_kernel,
        out_shape=jax.ShapeDtypeStruct((n_pad, HEAD_TOT), jnp.float32),
        grid=(n_pad // tb,),
        in_specs=[
            pl.BlockSpec((tb, IN_FLAT), lambda i: (i, 0)),          # x tile
            pl.BlockSpec((IN_FLAT, CONV1_FLAT), const),             # conv1 matrix
            pl.BlockSpec((1, CONV1_FLAT), const),                   # conv1 bias (tiled)
            pl.BlockSpec((CONV1_FLAT, CONV2_FLAT), const),          # conv2 matrix
            pl.BlockSpec((1, CONV2_FLAT), const),                   # conv2 bias (tiled)
            pl.BlockSpec((CONV2_FLAT, FC_HIDDEN), const),           # fc weights (perm folded)
            pl.BlockSpec((1, FC_HIDDEN), const),                    # fc bias
            pl.BlockSpec((FC_HIDDEN, HEAD_TOT), const),             # fused head weights
            pl.BlockSpec((1, HEAD_TOT), const),                     # fused head bias
        ],
        out_specs=pl.BlockSpec((tb, HEAD_TOT), lambda i: (i, 0)),
        compiler_params=pltpu.CompilerParams(
            dimension_semantics=("parallel",)),                     # megacore-shard the batch
    )(x_flat, kp["m1"], kp["b1"], kp["m2"], kp["b2"],
      kp["wfc"], kp["bfc"], kp["wh"], kp["bh"])

    out = out[:n]
    return out[:, :HEAD1_OUT], out[:, HEAD1_OUT:]


# ------------------------------ JAX glue ------------------------------------
@jax.jit
def custom_network_forward(x_nchw, kernel_params):
    """ConvBlock -> FullyConnBlock -> (first_head, second_head), single fused batched kernel."""
    n = x_nchw.shape[0]
    # (N, 2, 6, 7) -> (N, 84) flattened in (h, w, c) order (matches conv-matrix row indexing).
    x_flat = jnp.transpose(x_nchw, (0, 2, 3, 1)).reshape(n, IN_FLAT).astype(jnp.float32)
    return _fused_forward(x_flat, kernel_params, n)


# ------------------------------ parameters ----------------------------------
def init_params(key):
    """Deterministic synthetic parameters in PyTorch layout (Conv2d OIHW, Linear (out,in))."""
    ks = jax.random.split(key, 10)
    s = 0.1
    return {
        "w_c1": s * jax.random.normal(ks[0], (C_CONV1, C_IN, 3, 3), jnp.float32),
        "b_c1": s * jax.random.normal(ks[1], (C_CONV1,), jnp.float32),
        "w_c2": s * jax.random.normal(ks[2], (C_CONV2, C_CONV1, 3, 3), jnp.float32),
        "b_c2": s * jax.random.normal(ks[3], (C_CONV2,), jnp.float32),
        "w_fc": s * jax.random.normal(ks[4], (FC_HIDDEN, CONV2_FLAT), jnp.float32),
        "b_fc": s * jax.random.normal(ks[5], (FC_HIDDEN,), jnp.float32),
        "w_h1": s * jax.random.normal(ks[6], (HEAD1_OUT, FC_HIDDEN), jnp.float32),
        "b_h1": s * jax.random.normal(ks[7], (HEAD1_OUT,), jnp.float32),
        "w_h2": s * jax.random.normal(ks[8], (HEAD2_OUT, FC_HIDDEN), jnp.float32),
        "b_h2": s * jax.random.normal(ks[9], (HEAD2_OUT,), jnp.float32),
    }


def _conv_matrix(w_oihw):
    """Fold a 3x3 'same'-padded conv into a dense block-Toeplitz matrix.

    Row index    = (h_in * W + w_in) * C_in + c_in
    Column index = (h_out * W + w_out) * C_out + c_out
    Out-of-board taps are simply absent (zero rows), so padding semantics are exact.
    """
    w = np.asarray(w_oihw, np.float32)                      # (Cout, Cin, 3, 3)
    c_out, c_in = w.shape[0], w.shape[1]
    m = np.zeros((BOARD_H * BOARD_W * c_in, BOARD_H * BOARD_W * c_out), np.float32)
    for kh in range(3):
        for kw in range(3):
            blk = w[:, :, kh, kw].T                         # (Cin, Cout)
            for ho in range(BOARD_H):
                hi = ho + kh - 1
                if not (0 <= hi < BOARD_H):
                    continue
                for wo in range(BOARD_W):
                    wi = wo + kw - 1
                    if not (0 <= wi < BOARD_W):
                        continue
                    r0 = (hi * BOARD_W + wi) * c_in
                    c0 = (ho * BOARD_W + wo) * c_out
                    m[r0:r0 + c_in, c0:c0 + c_out] = blk
    return jnp.asarray(m)


def prepare_kernel_params(p):
    """One-time fold of conv structure, flatten permutation and head fusion into the weights."""
    # Biases tiled to the per-position (pos*C + c) feature layout.
    b1 = jnp.tile(p["b_c1"], BOARD_H * BOARD_W).reshape(1, CONV1_FLAT)
    b2 = jnp.tile(p["b_c2"], BOARD_H * BOARD_W).reshape(1, CONV2_FLAT)

    # FC weights: torch flatten is (c, h, w); our conv output layout is (h, w, c).
    wfc = p["w_fc"].reshape(FC_HIDDEN, C_CONV2, BOARD_H, BOARD_W)   # (f, c, h, w)
    wfc = jnp.transpose(wfc, (2, 3, 1, 0)).reshape(CONV2_FLAT, FC_HIDDEN)  # ((h,w,c), f)

    return {
        "m1": _conv_matrix(p["w_c1"]), "b1": b1,                    # (84, 336),  (1, 336)
        "m2": _conv_matrix(p["w_c2"]), "b2": b2,                    # (336, 336), (1, 336)
        "wfc": wfc, "bfc": p["b_fc"].reshape(1, FC_HIDDEN),         # (336, 32),  (1, 32)
        "wh": jnp.concatenate([p["w_h1"].T, p["w_h2"].T], axis=1),  # (32, 8)
        "bh": jnp.concatenate([p["b_h1"], p["b_h2"]]).reshape(1, HEAD_TOT),  # (1, 8)
    }


# ------------------------------ reference (pure JAX / XLA) -------------------
def _reference_forward(x_nchw, p):
    x = x_nchw.astype(jnp.float32)

    def conv(t, w, b):
        y = jax.lax.conv_general_dilated(
            t, w, window_strides=(1, 1), padding=((1, 1), (1, 1)),
            dimension_numbers=("NCHW", "OIHW", "NCHW"))
        return jnp.maximum(y + b[None, :, None, None], 0.0)

    h = conv(x, p["w_c1"], p["b_c1"])
    h = conv(h, p["w_c2"], p["b_c2"])
    h = h.reshape(h.shape[0], -1)                       # torch.flatten(start_dim=1): (C,H,W) order
    h = jnp.maximum(h @ p["w_fc"].T + p["b_fc"], 0.0)
    o1 = h @ p["w_h1"].T + p["b_h1"]
    o2 = jnp.tanh(h @ p["w_h2"].T + p["b_h2"])
    return o1, o2


if __name__ == "__main__":
    key = jax.random.PRNGKey(0)
    k_x, k_p = jax.random.split(key)

    # batch=2, 2 channels, 6x7 Connect4 board
    x = jax.random.normal(k_x, (2, C_IN, BOARD_H, BOARD_W), jnp.float32)
    params = init_params(k_p)
    kparams = prepare_kernel_params(params)   # one-time layout / structure fold

    out1, out2 = custom_network_forward(x, kparams)
    out1, out2 = jax.block_until_ready((out1, out2))

    ref1, ref2 = _reference_forward(x, params)
    assert out1.shape == (2, HEAD1_OUT) and out2.shape == (2, HEAD2_OUT)
    assert jnp.allclose(out1, ref1, atol=5e-4, rtol=1e-3)
    assert jnp.allclose(out2, ref2, atol=5e-4, rtol=1e-3)

    print("KERNEL_OK")
</pallas_src>

<mosaic_0001>
module attributes {stable_mosaic.version = 11 : i64} {
  func.func @_fused_kernel(%arg0: i32, %arg1: memref<8x84xf32, #tpu.memory_space<vmem>>, %arg2: memref<84x336xf32, #tpu.memory_space<vmem>>, %arg3: memref<1x336xf32, #tpu.memory_space<vmem>>, %arg4: memref<336x336xf32, #tpu.memory_space<vmem>>, %arg5: memref<1x336xf32, #tpu.memory_space<vmem>>, %arg6: memref<336x32xf32, #tpu.memory_space<vmem>>, %arg7: memref<1x32xf32, #tpu.memory_space<vmem>>, %arg8: memref<32x8xf32, #tpu.memory_space<vmem>>, %arg9: memref<1x8xf32, #tpu.memory_space<vmem>>, %arg10: memref<8x8xf32, #tpu.memory_space<vmem>>) attributes {dimension_semantics = [#tpu.dimension_semantics<parallel>], iteration_bounds = array<i64: 1>, scalar_prefetch = 0 : i64, scratch_operands = 0 : i64, tpu.core_type = #tpu.core_type<tc>, window_params = [{transform_indices = @transform_0, window_bounds = array<i64: 8, 84>}, {pipeline_mode = #tpu.pipeline_mode<synchronous>, transform_indices = @transform_1, window_bounds = array<i64: 84, 336>}, {pipeline_mode = #tpu.pipeline_mode<synchronous>, transform_indices = @transform_2, window_bounds = array<i64: 1, 336>}, {pipeline_mode = #tpu.pipeline_mode<synchronous>, transform_indices = @transform_3, window_bounds = array<i64: 336, 336>}, {pipeline_mode = #tpu.pipeline_mode<synchronous>, transform_indices = @transform_4, window_bounds = array<i64: 1, 336>}, {pipeline_mode = #tpu.pipeline_mode<synchronous>, transform_indices = @transform_5, window_bounds = array<i64: 336, 32>}, {pipeline_mode = #tpu.pipeline_mode<synchronous>, transform_indices = @transform_6, window_bounds = array<i64: 1, 32>}, {pipeline_mode = #tpu.pipeline_mode<synchronous>, transform_indices = @transform_7, window_bounds = array<i64: 32, 8>}, {pipeline_mode = #tpu.pipeline_mode<synchronous>, transform_indices = @transform_8, window_bounds = array<i64: 1, 8>}, {transform_indices = @transform_9, window_bounds = array<i64: 8, 8>}]} {
    %c0 = arith.constant 0 : index
    %c0_0 = arith.constant 0 : index
    %0 = vector.load %arg1[%c0, %c0_0] : memref<8x84xf32, #tpu.memory_space<vmem>>, vector<8x84xf32>
    %c0_1 = arith.constant 0 : index
    %c0_2 = arith.constant 0 : index
    %1 = vector.load %arg2[%c0_1, %c0_2] : memref<84x336xf32, #tpu.memory_space<vmem>>, vector<84x336xf32>
    %cst = arith.constant dense<0.000000e+00> : vector<8x336xf32>
    %2 = tpu.matmul %0, %1, %cst {dimension_numbers = #tpu.dot_dimension_numbers<[1], [0], [0], [1], [0, 0, 1, 1], [], []>} : vector<8x84xf32>, vector<84x336xf32>, vector<8x336xf32> -> vector<8x336xf32>
    %c0_3 = arith.constant 0 : index
    %c0_4 = arith.constant 0 : index
    %3 = vector.load %arg3[%c0_3, %c0_4] : memref<1x336xf32, #tpu.memory_space<vmem>>, vector<1x336xf32>
    %4 = vector.broadcast %3 : vector<1x336xf32> to vector<8x336xf32>
    %5 = arith.addf %2, %4 : vector<8x336xf32>
    %cst_5 = arith.constant 0.000000e+00 : f32
    %6 = vector.broadcast %cst_5 : f32 to vector<8x336xf32>
    %7 = arith.maximumf %5, %6 : vector<8x336xf32>
    %c0_6 = arith.constant 0 : index
    %c0_7 = arith.constant 0 : index
    %8 = vector.load %arg4[%c0_6, %c0_7] : memref<336x336xf32, #tpu.memory_space<vmem>>, vector<336x336xf32>
    %cst_8 = arith.constant dense<0.000000e+00> : vector<8x336xf32>
    %9 = tpu.matmul %7, %8, %cst_8 {dimension_numbers = #tpu.dot_dimension_numbers<[1], [0], [0], [1], [0, 0, 1, 1], [], []>} : vector<8x336xf32>, vector<336x336xf32>, vector<8x336xf32> -> vector<8x336xf32>
    %c0_9 = arith.constant 0 : index
    %c0_10 = arith.constant 0 : index
    %10 = vector.load %arg5[%c0_9, %c0_10] : memref<1x336xf32, #tpu.memory_space<vmem>>, vector<1x336xf32>
    %11 = vector.broadcast %10 : vector<1x336xf32> to vector<8x336xf32>
    %12 = arith.addf %9, %11 : vector<8x336xf32>
    %cst_11 = arith.constant 0.000000e+00 : f32
    %13 = vector.broadcast %cst_11 : f32 to vector<8x336xf32>
    %14 = arith.maximumf %12, %13 : vector<8x336xf32>
    %c0_12 = arith.constant 0 : index
    %c0_13 = arith.constant 0 : index
    %15 = vector.load %arg6[%c0_12, %c0_13] : memref<336x32xf32, #tpu.memory_space<vmem>>, vector<336x32xf32>
    %cst_14 = arith.constant dense<0.000000e+00> : vector<8x32xf32>
    %16 = tpu.matmul %14, %15, %cst_14 {dimension_numbers = #tpu.dot_dimension_numbers<[1], [0], [0], [1], [0, 0, 1, 1], [], []>} : vector<8x336xf32>, vector<336x32xf32>, vector<8x32xf32> -> vector<8x32xf32>
    %c0_15 = arith.constant 0 : index
    %c0_16 = arith.constant 0 : index
    %17 = vector.load %arg7[%c0_15, %c0_16] : memref<1x32xf32, #tpu.memory_space<vmem>>, vector<1x32xf32>
    %18 = vector.broadcast %17 : vector<1x32xf32> to vector<8x32xf32>
    %19 = arith.addf %16, %18 : vector<8x32xf32>
    %cst_17 = arith.constant 0.000000e+00 : f32
    %20 = vector.broadcast %cst_17 : f32 to vector<8x32xf32>
    %21 = arith.maximumf %19, %20 : vector<8x32xf32>
    %c0_18 = arith.constant 0 : index
    %c0_19 = arith.constant 0 : index
    %22 = vector.load %arg8[%c0_18, %c0_19] : memref<32x8xf32, #tpu.memory_space<vmem>>, vector<32x8xf32>
    %cst_20 = arith.constant dense<0.000000e+00> : vector<8x8xf32>
    %23 = tpu.matmul %21, %22, %cst_20 {dimension_numbers = #tpu.dot_dimension_numbers<[1], [0], [0], [1], [0, 0, 1, 1], [], []>} : vector<8x32xf32>, vector<32x8xf32>, vector<8x8xf32> -> vector<8x8xf32>
    %c0_21 = arith.constant 0 : index
    %c0_22 = arith.constant 0 : index
    %24 = vector.load %arg9[%c0_21, %c0_22] : memref<1x8xf32, #tpu.memory_space<vmem>>, vector<1x8xf32>
    %25 = vector.broadcast %24 : vector<1x8xf32> to vector<8x8xf32>
    %26 = arith.addf %23, %25 : vector<8x8xf32>
    %27 = tpu.iota {dimensions = array<i32: 1>} : vector<8x8xi32>
    %c7_i32 = arith.constant 7 : i32
    %28 = vector.broadcast %c7_i32 : i32 to vector<8x8xi32>
    %29 = arith.cmpi sge, %27, %28 : vector<8x8xi32>
    %30 = math.tanh %26 : vector<8x8xf32>
    %31 = arith.select %29, %30, %26 : vector<8x8xi1>, vector<8x8xf32>
    %c0_23 = arith.constant 0 : index
    %c0_24 = arith.constant 0 : index
    %32 = vector.load %arg10[%c0_23, %c0_24] : memref<8x8xf32, #tpu.memory_space<vmem>>, vector<8x8xf32>
    tpu.vector_store %arg10[%c0_23, %c0_24], %31 {strides = array<i32>} : memref<8x8xf32, #tpu.memory_space<vmem>>, vector<8x8xf32>,
    return
  }
  func.func @transform_0(%arg0: i32) -> (i32, i32) {
    %c0_i32 = arith.constant 0 : i32
    %c0_i32_0 = arith.constant 0 : i32
    return %arg0, %c0_i32 : i32, i32
  }
  func.func @transform_1(%arg0: i32) -> (i32, i32) {
    %c0_i32 = arith.constant 0 : i32
    %c0_i32_0 = arith.constant 0 : i32
    %c0_i32_1 = arith.constant 0 : i32
    return %c0_i32, %c0_i32_0 : i32, i32
  }
  func.func @transform_2(%arg0: i32) -> (i32, i32) {
    %c0_i32 = arith.constant 0 : i32
    %c0_i32_0 = arith.constant 0 : i32
    %c0_i32_1 = arith.constant 0 : i32
    return %c0_i32, %c0_i32_0 : i32, i32
  }
  func.func @transform_3(%arg0: i32) -> (i32, i32) {
    %c0_i32 = arith.constant 0 : i32
    %c0_i32_0 = arith.constant 0 : i32
    %c0_i32_1 = arith.constant 0 : i32
    return %c0_i32, %c0_i32_0 : i32, i32
  }
  func.func @transform_4(%arg0: i32) -> (i32, i32) {
    %c0_i32 = arith.constant 0 : i32
    %c0_i32_0 = arith.constant 0 : i32
    %c0_i32_1 = arith.constant 0 : i32
    return %c0_i32, %c0_i32_0 : i32, i32
  }
  func.func @transform_5(%arg0: i32) -> (i32, i32) {
    %c0_i32 = arith.constant 0 : i32
    %c0_i32_0 = arith.constant 0 : i32
    %c0_i32_1 = arith.constant 0 : i32
    return %c0_i32, %c0_i32_0 : i32, i32
  }
  func.func @transform_6(%arg0: i32) -> (i32, i32) {
    %c0_i32 = arith.constant 0 : i32
    %c0_i32_0 = arith.constant 0 : i32
    %c0_i32_1 = arith.constant 0 : i32
    return %c0_i32, %c0_i32_0 : i32, i32
  }
  func.func @transform_7(%arg0: i32) -> (i32, i32) {
    %c0_i32 = arith.constant 0 : i32
    %c0_i32_0 = arith.constant 0 : i32
    %c0_i32_1 = arith.constant 0 : i32
    return %c0_i32, %c0_i32_0 : i32, i32
  }
  func.func @transform_8(%arg0: i32) -> (i32, i32) {
    %c0_i32 = arith.constant 0 : i32
    %c0_i32_0 = arith.constant 0 : i32
    %c0_i32_1 = arith.constant 0 : i32
    return %c0_i32, %c0_i32_0 : i32, i32
  }
  func.func @transform_9(%arg0: i32) -> (i32, i32) {
    %c0_i32 = arith.constant 0 : i32
    %c0_i32_0 = arith.constant 0 : i32
    return %arg0, %c0_i32 : i32, i32
  }
}

</mosaic_0001>

<bundles_post_ra>
// kernel: custom_network_forward.1
= control target key start
LH: loop header
LB: loop body
LE: loop exit
PB: predicated region body
PF: predicated region fallthrough
CT: control target
= control target key end

     0   :  { %14 = vsyncpa [#allocation3], 0  ;;  %s1434_s30 = smov [#allocation2]   ;;  %s1812_s0 = inlined_call_operand.vmem [shape: f32[8,84], index: 0, kind: input, shape index: {}]   ;;  %s1813_s1 = inlined_call_operand.vmem [shape: f32[84,336], index: 1, kind: input, shape index: {}]   ;;  %s1814_s2 = inlined_call_operand.vmem [shape: f32[1,336], index: 2, kind: input, shape index: {}]   ;;  %s1815_s3 = inlined_call_operand.hbm [shape: f32[336,336], index: 3, kind: input, shape index: {}]   ;;  %s1816_s4 = inlined_call_operand.vmem [shape: f32[1,336], index: 4, kind: input, shape index: {}]   ;;  %s1817_s5 = inlined_call_operand.vmem [shape: f32[336,32], index: 5, kind: input, shape index: {}]   ;;  %s1818_s6 = inlined_call_operand.vmem [shape: f32[1,32], index: 6, kind: input, shape index: {}]   ;;  %s1819_s7 = inlined_call_operand.vmem [shape: f32[32,8], index: 7, kind: input, shape index: {}]   ;;  %s1820_s8 = inlined_call_operand.vmem [shape: f32[1,8], index: 8, kind: input, shape index: {}]   ;;  %s1821_s9 = inlined_call_operand.vmem [shape: f32[8,8], index: 9, kind: output, shape index: {}]  }
   0x1   :  { %s26_s10 = sshll.u32 %s1434_s30, 4  ;;  %s1410_s13 = scalar_lea.hbm %s1815_s3, 16128  ;;  %s27_s10 = int_to_ptr.vmem [resolvable:$true] %s26_s10 }
   0x2   :  { %p1411_p0 = scmp.ne.s32.totalorder %s1815_s3, %s1410_s13  ;;  %p1414_p1 = scmp.lt.u32.totalorder %s1410_s13, %s1815_s3 }
   0x4   :  { %p1416_p2 = pnand %p1414_p1, %p1411_p0 }
   0x6   :  { %1419 = shalt.err (!%p1416_p2)
}
   0x7   :  { %s1420_s18 = scalar_lea.vmem %s27_s10, 16128  ;;  %p1425_p4 = scmp.lt.s32.totalorder %s27_s10, %s27_s10 }
   0x8   :  { %p1421_p3 = scmp.ne.s32.totalorder %s27_s10, %s1420_s18  ;;  %p1426_p5 = scmp.lt.s32.totalorder %s1420_s18, %s1420_s18 }
   0xa   :  { %p1427_p6 = por %p1426_p5, %p1425_p4 }
   0xc   :  { %p1428_p7 = pnand %p1427_p6, %p1421_p3 }
   0xe   :  { %1431 = shalt.err (!%p1428_p7)
}
   0xf   :  { %s1435_s19 = smov 384   ;;  %s1436_s20 = smov 24  }
  0x10   :  { %32 = dma.hbm_to_vmem [thread:$0]  %s1815_s3, 16128, %s27_s10, [#allocation3], %s1435_s19, %s1435_s19, %s1436_s20  }
  0x11   :  { %1432 = dma.done.wait [#allocation3], 16128  }
  0x12   :  { %1433 = vsyncadd [#allocation3], 4294951168  ;;  %v1437_v0 = vmov 0.0|0.0   ;;  %v1438_v1 = vmov 0.0   ;;  %vm1439_vm0 = vmmov 0   ;;  %v48_v2 = vld [vmem:[%s1813_s1 + $0x8] sm:$0xff] }
  0x13   :  { %1199 = vmatprep.subr.bf16.mxu1 %v1437_v0  ;;  %175 = vmatprep.mubr.f32.mxu0 %v1438_v1  ;;  %v51_v3 = vld [vmem:[%s1813_s1 + $0x20] sm:$0xff]  ;;  %v50_v6 = vld [vmem:[%s1813_s1 + $0x18] sm:$0xff]  ;;  %v57_v8 = vld [vmem:[%s1813_s1 + $0x50] sm:$0xff]  ;;  %vm101_vm1 = vcmask 1043456   ;;  %vm97_vm2 = vcmask 687104   ;;  %vm398_vm3 = vcmask 654336  }
  0x14   :  { %1119 = vmatprep.mubr.msk.f32.mxu1 %vm1439_vm0, %v1438_v1  ;;  %v47_v4 = vld [vmem:[%s1813_s1] sm:$0xff]  ;;  %v1179_v5 = vpack.c.bf16 %v51_v3, %v48_v2  ;;  %v54_v7 = vld [vmem:[%s1813_s1 + $0x38] sm:$0xff]  ;;  %v53_v11 = vld [vmem:[%s1813_s1 + $0x30] sm:$0xff]  ;;  %vm891_vm4 = vcmask 261120   ;;  %vm970_vm6 = vcmask 64512  }
  0x15   :  { %v1181_v9 = vpack.c.bf16 %v50_v6, %v47_v4  ;;  %v1183_v10 = vpack.c.bf16 %v57_v8, %v54_v7  ;;  %v56_v12 = vld [vmem:[%s1813_s1 + $0x48] sm:$0xff]  ;;  %v63_v14 = vld [vmem:[%s1813_s1 + $0x80] sm:$0xff]  ;;  %v62_v18 = vld [vmem:[%s1813_s1 + $0x78] sm:$0xff] }
  0x16   :  { %v60_v13 = vld [vmem:[%s1813_s1 + $0x68] sm:$0xff]  ;;  %1180 = vmatprep.subr.bf16.mxu0 %v1179_v5  ;;  %v1185_v15 = vpack.c.bf16 %v56_v12, %v53_v11  ;;  %v59_v17 = vld [vmem:[%s1813_s1 + $0x60] sm:$0xff]  ;;  %v66_v19 = vld [vmem:[%s1813_s1 + $0x98] sm:$0xff] }
  0x17   :  { %1182 = vmatpush1.bf16.msra.mxu0 %v1181_v9  ;;  %v1187_v16 = vpack.c.bf16 %v63_v14, %v60_v13  ;;  %v69_v20 = vld [vmem:[%s1813_s1 + $0xb0] sm:$0xff]  ;;  %v52_v22 = vld [vmem:[%s1813_s1 + $0x28] sm:$0xff]  ;;  %v1189_v23 = vpack.c.bf16 %v62_v18, %v59_v17  ;;  %v55_v25 = vld [vmem:[%s1813_s1 + $0x40] sm:$0xff] }
  0x18   :  { %1184 = vmatprep.subr.bf16.mxu0 %v1183_v10  ;;  %v49_v21 = vld [vmem:[%s1813_s1 + $0x10] sm:$0xff]  ;;  %v58_v26 = vld [vmem:[%s1813_s1 + $0x58] sm:$0xff]  ;;  %v1191_v27 = vpack.c.bf16 %v69_v20, %v66_v19  ;;  %v68_v29 = vld [vmem:[%s1813_s1 + $0xa8] sm:$0xff] }
  0x19   :  { %v1200_v24 = vpack.c.bf16 %v52_v22, %v49_v21  ;;  %v65_v28 = vld [vmem:[%s1813_s1 + $0x90] sm:$0xff]  ;;  %v72_v30 = vld [vmem:[%s1813_s1 + $0xc8] sm:$0xff]  ;;  %v75_v31 = vld [vmem:[%s1813_s1 + $0xe0] sm:$0xff]  ;;  %v1203_v32 = vpack.c.bf16 %v58_v26, %v55_v25 }
  0x1a   :  { %v61_v33 = vld [vmem:[%s1813_s1 + $0x70] sm:$0xff]  ;;  %v64_v34 = vld [vmem:[%s1813_s1 + $0x88] sm:$0xff]  ;;  %v1193_v35 = vpack.c.bf16 %v68_v29, %v65_v28  ;;  %v1195_v36 = vpack.c.bf16 %v75_v31, %v72_v30  ;;  %v71_v37 = vld [vmem:[%s1813_s1 + $0xc0] sm:$0xff] }
  0x1b   :  { %1186 = vmatpush1.bf16.msra.mxu0 %v1185_v15  ;;  %1201 = vmatpush3.bf16.msra.mxu1 %v1200_v24  ;;  %v74_v38 = vld [vmem:[%s1813_s1 + $0xd8] sm:$0xff]  ;;  %v1206_v39 = vpack.c.bf16 %v64_v34, %v61_v33  ;;  %v67_v40 = vld [vmem:[%s1813_s1 + $0xa0] sm:$0xff]  ;;  %v73_v45 = vld [vmem:[%s1813_s1 + $0xd0] sm:$0xff] }
  0x1c   :  { %1188 = vmatprep.subr.bf16.mxu0 %v1187_v16  ;;  %1202 = vmatprep.subr.bf16.mxu1 %v1437_v0  ;;  %v70_v41 = vld [vmem:[%s1813_s1 + $0xb8] sm:$0xff]  ;;  %v1197_v42 = vpack.c.bf16 %v74_v38, %v71_v37  ;;  %v256_v46 = vld [vmem:[#allocation2 + $0x8] sm:$0xff]  ;;  %v259_v47 = vld [vmem:[#allocation2 + $0x20] sm:$0xff] }
  0x1d   :  { %v78_v43 = vld [vmem:[%s1813_s1 + $0xf8] sm:$0xf]  ;;  %v1209_v44 = vpack.c.bf16 %v70_v41, %v67_v40  ;;  %v76_v48 = vld [vmem:[%s1813_s1 + $0xe8] sm:$0xff]  ;;  %v255_v49 = vld [vmem:[#allocation2] sm:$0xff]  ;;  %v1214_v54 = vpack.c.bf16 %v259_v47, %v256_v46 }
  0x1e   :  { %v258_v50 = vld [vmem:[#allocation2 + $0x18] sm:$0xff]  ;;  %v265_v52 = vld [vmem:[#allocation2 + $0x50] sm:$0xff]  ;;  %v46_v55 = vld [vmem:[%s1812_s0] sm:$0xff]  ;;  %v1212_v56 = vpack.c.bf16 %v76_v48, %v73_v45 }
  0x1f   :  { %1190 = vmatpush1.bf16.msra.mxu0 %v1189_v23  ;;  %1204 = vmatpush3.bf16.msra.mxu1 %v1203_v32  ;;  %v262_v51 = vld [vmem:[#allocation2 + $0x38] sm:$0xff]  ;;  %v77_v53 = vld [vmem:[%s1813_s1 + $0xf0] sm:$0xf]  ;;  %v1216_v57 = vpack.c.bf16 %v258_v50, %v255_v49  ;;  %v264_v60 = vld [vmem:[#allocation2 + $0x48] sm:$0xff] }
  0x20   :  { %1192 = vmatprep.subr.bf16.mxu0 %v1191_v27  ;;  %1205 = vmatprep.subr.bf16.mxu1 %v1437_v0  ;;  %v1218_v58 = vpack.c.bf16 %v265_v52, %v262_v51  ;;  %v261_v59 = vld [vmem:[#allocation2 + $0x30] sm:$0xff]  ;;  %v268_v61 = vld [vmem:[#allocation2 + $0x68] sm:$0xff]  ;;  %v271_v62 = vld [vmem:[#allocation2 + $0x80] sm:$0xff] }
  0x21   :  { %v79_v63 = vld [vmem:[%s1813_s1 + $0x100] sm:$0xf]  ;;  %v305_v2 = vld [vmem:[#allocation2 + $0x190] sm:$0xff]  ;;  %v308_v3 = vld [vmem:[#allocation2 + $0x1a8] sm:$0xff]  ;;  %v1220_v4 = vpack.c.bf16 %v264_v60, %v261_v59  ;;  %v1222_v8 = vpack.c.bf16 %v271_v62, %v268_v61 }
  0x22   :  { %v267_v5 = vld [vmem:[#allocation2 + $0x60] sm:$0xff]  ;;  %v257_v6 = vld [vmem:[#allocation2 + $0x10] sm:$0xff]  ;;  %v260_v7 = vld [vmem:[#allocation2 + $0x28] sm:$0xff]  ;;  %v1298_v14 = vpack.c.bf16 %v308_v3, %v305_v2 }
  0x23   :  { %1194 = vmatpush1.bf16.msra.mxu0 %v1193_v35  ;;  %1207 = vmatpush3.bf16.msra.mxu1 %v1206_v39  ;;  %v270_v9 = vld [vmem:[#allocation2 + $0x78] sm:$0xff]  ;;  %v311_v10 = vld [vmem:[#allocation2 + $0x1c0] sm:$0xff]  ;;  %v277_v13 = vld [vmem:[#allocation2 + $0xb0] sm:$0xff]  ;;  %v1300_v15 = vpack.c.bf16 %v260_v7, %v257_v6 }
  0x24   :  { %1196 = vmatprep.subr.bf16.mxu0 %v1195_v36  ;;  %1208 = vmatprep.subr.bf16.mxu1 %v1437_v0  ;;  %v314_v11 = vld [vmem:[#allocation2 + $0x1d8] sm:$0xff]  ;;  %v1224_v16 = vpack.c.bf16 %v270_v9, %v267_v5  ;;  %v273_v17 = vld [vmem:[#allocation2 + $0x90] sm:$0xff]  ;;  %v263_v19 = vld [vmem:[#allocation2 + $0x40] sm:$0xff] }
  0x25   :  { %v274_v12 = vld [vmem:[#allocation2 + $0x98] sm:$0xff]  ;;  %v1302_v18 = vpack.c.bf16 %v314_v11, %v311_v10  ;;  %v276_v22 = vld [vmem:[#allocation2 + $0xa8] sm:$0xff]  ;;  %v317_v23 = vld [vmem:[#allocation2 + $0x1f0] sm:$0xff] }
  0x26   :  { %v266_v20 = vld [vmem:[#allocation2 + $0x58] sm:$0xff]  ;;  %v1226_v21 = vpack.c.bf16 %v277_v13, %v274_v12  ;;  %v320_v24 = vld [vmem:[#allocation2 + $0x208] sm:$0xff]  ;;  %v283_v26 = vld [vmem:[#allocation2 + $0xe0] sm:$0xff]  ;;  %v1228_v28 = vpack.c.bf16 %v276_v22, %v273_v17 }
  0x27   :  { %1198 = vmatpush1.bf16.msra.mxu0 %v1197_v42  ;;  %1210 = vmatpush3.bf16.msra.mxu1 %v1209_v44  ;;  %v280_v25 = vld [vmem:[#allocation2 + $0xc8] sm:$0xff]  ;;  %v1304_v27 = vpack.c.bf16 %v266_v20, %v263_v19  ;;  %v279_v29 = vld [vmem:[#allocation2 + $0xc0] sm:$0xff]  ;;  %v1306_v30 = vpack.c.bf16 %v320_v24, %v317_v23  ;;  %v269_v31 = vld [vmem:[#allocation2 + $0x70] sm:$0xff] }
  0x28   :  { %977 = vmatprep.subr.msk.mxu0 %vm101_vm1, %v78_v43  ;;  %1211 = vmatprep.subr.bf16.mxu1 %v1437_v0  ;;  %v272_v32 = vld [vmem:[#allocation2 + $0x88] sm:$0xff]  ;;  %v1230_v33 = vpack.c.bf16 %v283_v26, %v280_v25  ;;  %v282_v34 = vld [vmem:[#allocation2 + $0xd8] sm:$0xff]  ;;  %v323_v35 = vld [vmem:[#allocation2 + $0x220] sm:$0xff] }
  0x29   :  { %v326_v36 = vld [vmem:[#allocation2 + $0x238] sm:$0xff]  ;;  %v289_v38 = vld [vmem:[#allocation2 + $0x110] sm:$0xff]  ;;  %v1308_v39 = vpack.c.bf16 %v272_v32, %v269_v31  ;;  %v1232_v40 = vpack.c.bf16 %v282_v34, %v279_v29  ;;  %v275_v43 = vld [vmem:[#allocation2 + $0xa0] sm:$0xff] }
  0x2a   :  { %v286_v37 = vld [vmem:[#allocation2 + $0xf8] sm:$0xff]  ;;  %v285_v41 = vld [vmem:[#allocation2 + $0xf0] sm:$0xff]  ;;  %v1310_v42 = vpack.c.bf16 %v326_v36, %v323_v35  ;;  %v288_v46 = vld [vmem:[#allocation2 + $0x108] sm:$0xff] }
  0x2b   :  { %978 = vmatpush1.msk.msra.mxu0 %vm101_vm1, %v77_v53  ;;  %1213 = vmatpush3.bf16.msra.mxu1 %v1212_v56  ;;  %v278_v44 = vld [vmem:[#allocation2 + $0xb8] sm:$0xff]  ;;  %v1234_v45 = vpack.c.bf16 %v289_v38, %v286_v37  ;;  %v329_v47 = vld [vmem:[#allocation2 + $0x250] sm:$0xff]  ;;  %v332_v48 = vld [vmem:[#allocation2 + $0x268] sm:$0xff]  ;;  %v1236_v52 = vpack.c.bf16 %v288_v46, %v285_v41 }
  0x2c   :  { %979 = vmatmul.mubr.msk.f32.vlgmr.msra.gmra.mrb[0].mxu0 %vm97_vm2, %v46_v55  ;;  %1215 = vmatprep.subr.bf16.mxu0 %v1214_v54  ;;  %v292_v49 = vld [vmem:[#allocation2 + $0x128] sm:$0xff]  ;;  %v295_v50 = vld [vmem:[#allocation2 + $0x140] sm:$0xff]  ;;  %v1312_v51 = vpack.c.bf16 %v278_v44, %v275_v43  ;;  %v1314_v54 = vpack.c.bf16 %v332_v48, %v329_v47  ;;  %v338_v60 = vld [vmem:[#allocation2 + $0x298] sm:$0xff] }
  0x2d   :  { %1217 = vmatpush1.bf16.msra.mxu0 %v1216_v57  ;;  %1117 = vmatprep.subr.mxu1 %v1438_v1  ;;  %v291_v53 = vld [vmem:[#allocation2 + $0x120] sm:$0xff]  ;;  %v284_v56 = vld [vmem:[#allocation2 + $0xe8] sm:$0xff]  ;;  %v1238_v57 = vpack.c.bf16 %v295_v50, %v292_v49  ;;  %v298_v61 = vld [vmem:[#allocation2 + $0x158] sm:$0xff] }
  0x2e   :  { %1219 = vmatprep.subr.bf16.mxu0 %v1218_v58  ;;  %v294_v58 = vld [vmem:[#allocation2 + $0x138] sm:$0xff]  ;;  %v335_v59 = vld [vmem:[#allocation2 + $0x280] sm:$0xff]  ;;  %v301_v62 = vld [vmem:[#allocation2 + $0x170] sm:$0xff] }
  0x2f   :  { %1118 = vmatpush3.msk.msra.mxu1 %vm101_vm1, %v79_v63  ;;  %v1240_v2 = vpack.c.bf16 %v294_v58, %v291_v53  ;;  %v297_v3 = vld [vmem:[#allocation2 + $0x150] sm:$0xff]  ;;  %v287_v5 = vld [vmem:[#allocation2 + $0x100] sm:$0xff]  ;;  %v290_v6 = vld [vmem:[#allocation2 + $0x118] sm:$0xff]  ;;  %v1242_v7 = vpack.c.bf16 %v301_v62, %v298_v61 }
  0x30   :  { %1120 = vmatmul.mubr.msk.f32.vlgmr.msra.gmra.mrb[0].mxu1 %vm97_vm2, %v46_v55  ;;  %1299 = vmatprep.subr.bf16.mxu1 %v1298_v14  ;;  %v281_v55 = vld [vmem:[#allocation2 + $0xd0] sm:$0xff]  ;;  %v344_v10 = vld [vmem:[#allocation2 + $0x2c8] sm:$0xff]  ;;  %v307_v12 = vld [vmem:[#allocation2 + $0x1a0] sm:$0xff]  ;;  %v1320_v13 = vpack.c.bf16 %v290_v6, %v287_v5 }
  0x31   :  { %1221 = vmatpush1.bf16.msra.mxu0 %v1220_v4  ;;  %1301 = vmatpush3.bf16.msra.mxu1 %v1300_v15  ;;  %v1316_v63 = vpack.c.bf16 %v284_v56, %v281_v55  ;;  %v1318_v4 = vpack.c.bf16 %v338_v60, %v335_v59  ;;  %v341_v9 = vld [vmem:[#allocation2 + $0x2b0] sm:$0xff]  ;;  %v304_v11 = vld [vmem:[#allocation2 + $0x188] sm:$0xff]  ;;  %v303_v19 = vld [vmem:[#allocation2 + $0x180] sm:$0xff] }
  0x32   :  { %1223 = vmatprep.subr.bf16.mxu0 %v1222_v8  ;;  %1303 = vmatprep.subr.bf16.mxu1 %v1302_v18  ;;  %v300_v8 = vld [vmem:[#allocation2 + $0x168] sm:$0xff]  ;;  %v1322_v15 = vpack.c.bf16 %v344_v10, %v341_v9  ;;  %v1246_v18 = vpack.c.bf16 %v307_v12, %v304_v11  ;;  %v306_v20 = vld [vmem:[#allocation2 + $0x198] sm:$0xff]  ;;  %v313_v22 = vld [vmem:[#allocation2 + $0x1d0] sm:$0xff]  ;;  %v82_v12 = vlaneseq }
  0x33   :  { %v1244_v14 = vpack.c.bf16 %v300_v8, %v297_v3  ;;  %v296_v17 = vld [vmem:[#allocation2 + $0x148] sm:$0xff]  ;;  %v1248_v24 = vpack.c.bf16 %v306_v20, %v303_v19  ;;  %v309_v26 = vld [vmem:[#allocation2 + $0x1b0] sm:$0xff]  ;;  %v319_v29 = vld [vmem:[#allocation2 + $0x200] sm:$0xff] }
  0x34   :  { %v315_v32 = vld [vmem:[#allocation2 + $0x1e0] sm:$0xff]  ;;  %v322_v34 = vld [vmem:[#allocation2 + $0x218] sm:$0xff]  ;;  %v325_v35 = vld [vmem:[#allocation2 + $0x230] sm:$0xff] }
  0x35   :  { %1225 = vmatpush1.bf16.msra.mxu0 %v1224_v16  ;;  %1305 = vmatpush3.bf16.msra.mxu1 %v1304_v27  ;;  %v293_v16 = vld [vmem:[#allocation2 + $0x130] sm:$0xff]  ;;  %v312_v27 = vld [vmem:[#allocation2 + $0x1c8] sm:$0xff]  ;;  %v1258_v37 = vpack.c.bf16 %v325_v35, %v322_v34  ;;  %v331_v41 = vld [vmem:[#allocation2 + $0x260] sm:$0xff] }
  0x36   :  { %1227 = vmatprep.subr.bf16.mxu0 %v1226_v21  ;;  %1307 = vmatprep.subr.bf16.mxu1 %v1306_v30  ;;  %v310_v21 = vld [vmem:[#allocation2 + $0x1b8] sm:$0xff]  ;;  %v1324_v23 = vpack.c.bf16 %v296_v17, %v293_v16  ;;  %v1252_v30 = vpack.c.bf16 %v312_v27, %v309_v26  ;;  %v321_v38 = vld [vmem:[#allocation2 + $0x210] sm:$0xff]  ;;  %v327_v44 = vld [vmem:[#allocation2 + $0x240] sm:$0xff] }
  0x37   :  { %v1250_v25 = vpack.c.bf16 %v313_v22, %v310_v21  ;;  %v334_v46 = vld [vmem:[#allocation2 + $0x278] sm:$0xff]  ;;  %v337_v47 = vld [vmem:[#allocation2 + $0x290] sm:$0xff]  ;;  %v343_v53 = vld [vmem:[#allocation2 + $0x2c0] sm:$0xff] }
  0x38   :  { %v1266_v49 = vpack.c.bf16 %v337_v47, %v334_v46  ;;  %v333_v50 = vld [vmem:[#allocation2 + $0x270] sm:$0xff]  ;;  %v339_v56 = vld [vmem:[#allocation2 + $0x2a0] sm:$0xff]  ;;  %v346_v59 = vld [vmem:[#allocation2 + $0x2d8] sm:$0xff] }
  0x39   :  { %1229 = vmatpush1.bf16.msra.mxu0 %v1228_v28  ;;  %1309 = vmatpush3.bf16.msra.mxu1 %v1308_v39  ;;  %v316_v28 = vld [vmem:[#allocation2 + $0x1e8] sm:$0xff]  ;;  %v349_v60 = vld [vmem:[#allocation2 + $0x2f0] sm:$0xff]  ;;  %v347_v61 = vld [vmem:[#allocation2 + $0x2e0] sm:$0xff] }
  0x3a   :  { %1231 = vmatprep.subr.bf16.mxu0 %v1230_v33  ;;  %1311 = vmatprep.subr.bf16.mxu1 %v1310_v42  ;;  %v1254_v31 = vpack.c.bf16 %v319_v29, %v316_v28  ;;  %v318_v33 = vld [vmem:[#allocation2 + $0x1f8] sm:$0xff]  ;;  %v324_v39 = vld [vmem:[#allocation2 + $0x228] sm:$0xff]  ;;  %v1274_v62 = vpack.c.bf16 %v349_v60, %v346_v59  ;;  %v299_v6 = vld [vmem:[#allocation2 + $0x160] sm:$0xff] }
  0x3b   :  { %v1256_v36 = vpack.c.bf16 %v318_v33, %v315_v32  ;;  %v1260_v42 = vpack.c.bf16 %v324_v39, %v321_v38  ;;  %v348_v3 = vld [vmem:[#allocation2 + $0x2e8] sm:$0xff]  ;;  %v355_v10 = vld [vmem:[#allocation2 + $0x320] sm:$0xff]  ;;  %v358_v27 = vld [vmem:[#allocation2 + $0x338] sm:$0xff] }
  0x3c   :  { %v352_v9 = vld [vmem:[#allocation2 + $0x308] sm:$0xff]  ;;  %v351_v20 = vld [vmem:[#allocation2 + $0x300] sm:$0xff]  ;;  %v361_v28 = vld [vmem:[#allocation2 + $0x350] sm:$0xff] }
  0x3d   :  { %1233 = vmatpush1.bf16.msra.mxu0 %v1232_v40  ;;  %1313 = vmatpush3.bf16.msra.mxu1 %v1312_v51  ;;  %v328_v40 = vld [vmem:[#allocation2 + $0x248] sm:$0xff]  ;;  %v1278_v11 = vpack.c.bf16 %v355_v10, %v352_v9  ;;  %v357_v32 = vld [vmem:[#allocation2 + $0x330] sm:$0xff]  ;;  %v1282_v34 = vpack.c.bf16 %v361_v28, %v358_v27  ;;  %v367_v39 = vld [vmem:[#allocation2 + $0x380] sm:$0xff] }
  0x3e   :  { %1235 = vmatprep.subr.bf16.mxu0 %v1234_v45  ;;  %1315 = vmatprep.subr.bf16.mxu1 %v1314_v54  ;;  %v1262_v43 = vpack.c.bf16 %v331_v41, %v328_v40  ;;  %v330_v45 = vld [vmem:[#allocation2 + $0x258] sm:$0xff]  ;;  %v336_v51 = vld [vmem:[#allocation2 + $0x288] sm:$0xff]  ;;  %v365_v47 = vld [vmem:[#allocation2 + $0x370] sm:$0xff] }
  0x3f   :  { %v1264_v48 = vpack.c.bf16 %v330_v45, %v327_v44  ;;  %v1268_v54 = vpack.c.bf16 %v336_v51, %v333_v50  ;;  %v360_v35 = vld [vmem:[#allocation2 + $0x348] sm:$0xff]  ;;  %v363_v44 = vld [vmem:[#allocation2 + $0x360] sm:$0xff]  ;;  %v366_v46 = vld [vmem:[#allocation2 + $0x378] sm:$0xff] }
  0x40   :  { %v364_v38 = vld [vmem:[#allocation2 + $0x368] sm:$0xff]  ;;  %v373_v50 = vld [vmem:[#allocation2 + $0x3b0] sm:$0xff]  ;;  %v379_v60 = vld [vmem:[#allocation2 + $0x3e0] sm:$0xff] }
  0x41   :  { %1237 = vmatpush1.bf16.msra.mxu0 %v1236_v52  ;;  %1317 = vmatpush3.bf16.msra.mxu1 %v1316_v63  ;;  %v340_v52 = vld [vmem:[#allocation2 + $0x2a8] sm:$0xff]  ;;  %v350_v63 = vld [vmem:[#allocation2 + $0x2f8] sm:$0xff]  ;;  %v1286_v45 = vpack.c.bf16 %v367_v39, %v364_v38  ;;  %v707_v27 = vld [vmem:[%s1817_s5 + $0xa0] sm:$0xff] }
  0x42   :  { %1239 = vmatprep.subr.bf16.mxu0 %v1238_v57  ;;  %1319 = vmatprep.subr.bf16.mxu1 %v1318_v4  ;;  %v1270_v55 = vpack.c.bf16 %v343_v53, %v340_v52  ;;  %v342_v57 = vld [vmem:[#allocation2 + $0x2b8] sm:$0xff]  ;;  %v1326_v4 = vpack.c.bf16 %v350_v63, %v347_v61  ;;  %v1288_v52 = vpack.c.bf16 %v366_v46, %v363_v44  ;;  %v376_v59 = vld [vmem:[#allocation2 + $0x3c8] sm:$0xff]  ;;  %v693_v38 = vld [vmem:[%s1817_s5 + $0x30] sm:$0xff] }
  0x43   :  { %v1272_v58 = vpack.c.bf16 %v342_v57, %v339_v56  ;;  %v372_v56 = vld [vmem:[#allocation2 + $0x3a8] sm:$0xff]  ;;  %v371_v57 = vld [vmem:[#allocation2 + $0x3a0] sm:$0xff]  ;;  %v694_v39 = vld [vmem:[%s1817_s5 + $0x38] sm:$0xff] }
  0x44   :  { %v708_v28 = vld [vmem:[%s1817_s5 + $0xa8] sm:$0xff]  ;;  %v711_v44 = vld [vmem:[%s1817_s5 + $0xc0] sm:$0xff] }
  0x45   :  { %1241 = vmatpush1.bf16.msra.mxu0 %v1240_v2  ;;  %1321 = vmatpush3.bf16.msra.mxu1 %v1320_v13  ;;  %v345_v2 = vld [vmem:[#allocation2 + $0x2d0] sm:$0xff]  ;;  %v1620_v13 = vshrl.u32 %v82_v12, 7  ;;  %v712_v46 = vld [vmem:[%s1817_s5 + $0xc8] sm:$0xff] }
  0x46   :  { %1243 = vmatprep.subr.bf16.mxu0 %v1242_v7  ;;  %1323 = vmatprep.subr.bf16.mxu1 %v1322_v15  ;;  %v1276_v5 = vpack.c.bf16 %v348_v3, %v345_v2  ;;  %v302_v7 = vld [vmem:[#allocation2 + $0x178] sm:$0xff]  ;;  %v80_v15 = vld [vmem:[%s1814_s2] sm:$0x7]  ;;  %v1294_v3 = vpack.c.bf16 %v379_v60, %v376_v59  ;;  %v725_v60 = vld [vmem:[%s1817_s5 + $0x130] sm:$0xff] }
  0x47   :  { %v1328_v8 = vpack.c.bf16 %v302_v7, %v299_v6  ;;  %v88_v16 = vsub.s32 1, %v1620_v13  ;;  %v92_v51 = vsub.s32 2, %v1620_v13  ;;  %v375_v2 = vld [vmem:[#allocation2 + $0x3c0] sm:$0xff]  ;;  %v380_v6 = vld [vmem:[#allocation2 + $0x3e8] sm:$0xff]  ;;  %v698_v59 = vld [vmem:[%s1817_s5 + $0x58] sm:$0xff] }
  0x48   :  { %v703_v7 = vld [vmem:[%s1817_s5 + $0x80] sm:$0xff] }
  0x49   :  { %1245 = vmatpush1.bf16.msra.mxu0 %v1244_v14  ;;  %1325 = vmatpush3.bf16.msra.mxu1 %v1324_v23  ;;  %v84_v14 = vsub.s32 0, %v1620_v13  ;;  %v354_v23 = vld [vmem:[#allocation2 + $0x318] sm:$0xff]  ;;  %v93_v61 = vrot.slane %v80_v15, %v92_v51  ;;  %v880_v13 = vld [vmem:[%s1819_s7] sm:$0xff] }
  0x4a   :  { %1247 = vmatprep.subr.bf16.mxu0 %v1246_v18  ;;  %1327 = vmatprep.subr.bf16.mxu1 %v1326_v4  ;;  %v89_v18 = vrot.slane %v80_v15, %v88_v16  ;;  %v378_v4 = vld [vmem:[#allocation2 + $0x3d8] sm:$0xff] }
  0x4b   :  { %v85_v17 = vrot.slane %v80_v15, %v84_v14  ;;  %v1296_v10 = vpack.c.bf16 %v378_v4, %v375_v2 }
  0x4d   :  { %1249 = vmatpush1.bf16.msra.mxu0 %v1248_v24  ;;  %1329 = vmatpush3.bf16.msra.mxu1 %v1328_v8  ;;  %v353_v24 = vld [vmem:[#allocation2 + $0x310] sm:$0xff]  ;;  %v704_v8 = vld [vmem:[%s1817_s5 + $0x88] sm:$0xff] }
  0x4e   :  { %1251 = vmatprep.subr.bf16.mxu0 %v1250_v25  ;;  %1330 = vmatprep.subr.bf16.mxu1 %v1437_v0  ;;  %v356_v25 = vld [vmem:[#allocation2 + $0x328] sm:$0xff]  ;;  %v1345_v15 = vpack.c.bf16 %v704_v8, %v703_v7  ;;  %v727_v8 = vld [vmem:[%s1817_s5 + $0x140] sm:$0xff] }
  0x51   :  { %1253 = vmatpush1.bf16.msra.mxu0 %v1252_v30  ;;  %v1280_v30 = vpack.c.bf16 %v354_v23, %v351_v20  ;;  %v706_v20 = vld [vmem:[%s1817_s5 + $0x98] sm:$0xff] }
  0x52   :  { %1255 = vmatprep.subr.bf16.mxu0 %v1254_v31  ;;  %v1331_v31 = vpack.c.bf16 %v356_v25, %v353_v24  ;;  %v689_v24 = vld [vmem:[%s1817_s5 + $0x10] sm:$0xff]  ;;  %v690_v25 = vld [vmem:[%s1817_s5 + $0x18] sm:$0xff] }
  0x55   :  { %1257 = vmatpush1.bf16.msra.mxu0 %v1256_v36  ;;  %v359_v36 = vld [vmem:[#allocation2 + $0x340] sm:$0xff] }
  0x56   :  { %1259 = vmatprep.subr.bf16.mxu0 %v1258_v37  ;;  %v362_v37 = vld [vmem:[#allocation2 + $0x358] sm:$0xff] }
  0x59   :  { %1261 = vmatpush1.bf16.msra.mxu0 %v1260_v42  ;;  %v1284_v42 = vpack.c.bf16 %v360_v35, %v357_v32  ;;  %v709_v35 = vld [vmem:[%s1817_s5 + $0xb0] sm:$0xff] }
  0x5a   :  { %1263 = vmatprep.subr.bf16.mxu0 %v1262_v43  ;;  %v1334_v43 = vpack.c.bf16 %v362_v37, %v359_v36  ;;  %v710_v37 = vld [vmem:[%s1817_s5 + $0xb8] sm:$0xff] }
  0x5d   :  { %1265 = vmatpush1.bf16.msra.mxu0 %v1264_v48  ;;  %v368_v48 = vld [vmem:[#allocation2 + $0x388] sm:$0xff] }
  0x5e   :  { %1267 = vmatprep.subr.bf16.mxu0 %v1266_v49  ;;  %v370_v49 = vld [vmem:[#allocation2 + $0x398] sm:$0xff]  ;;  %v1337_v53 = vpack.c.bf16 %v368_v48, %v365_v47  ;;  %v695_v47 = vld [vmem:[%s1817_s5 + $0x40] sm:$0xff]  ;;  %v696_v48 = vld [vmem:[%s1817_s5 + $0x48] sm:$0xff] }
  0x61   :  { %1269 = vmatpush1.bf16.msra.mxu0 %v1268_v54  ;;  %v369_v54 = vld [vmem:[#allocation2 + $0x390] sm:$0xff] }
  0x62   :  { %1271 = vmatprep.subr.bf16.mxu0 %v1270_v55  ;;  %v1290_v55 = vpack.c.bf16 %v373_v50, %v370_v49  ;;  %v1361_v49 = vpack.c.bf16 %v712_v46, %v711_v44  ;;  %v723_v50 = vld [vmem:[%s1817_s5 + $0x120] sm:$0xff] }
  0x65   :  { %1273 = vmatpush1.bf16.msra.mxu0 %v1272_v58  ;;  %v374_v58 = vld [vmem:[#allocation2 + $0x3b8] sm:$0xff] }
  0x66   :  { %1275 = vmatprep.subr.bf16.mxu0 %v1274_v62  ;;  %v1292_v62 = vpack.c.bf16 %v372_v56, %v369_v54  ;;  %v1340_v63 = vpack.c.bf16 %v374_v58, %v371_v57  ;;  %v714_v54 = vld [vmem:[%s1817_s5 + $0xd8] sm:$0xff]  ;;  %v697_v58 = vld [vmem:[%s1817_s5 + $0x50] sm:$0xff] }
  0x67   :  { %v1367_v2 = vpack.c.bf16 %v698_v59, %v697_v58 }
  0x69   :  { %1277 = vmatpush1.bf16.msra.mxu0 %v1276_v5  ;;  %v377_v5 = vld [vmem:[#allocation2 + $0x3d0] sm:$0xff] }
  0x6a   :  { %1279 = vmatprep.subr.bf16.mxu0 %v1278_v11  ;;  %v1343_v11 = vpack.c.bf16 %v380_v6, %v377_v5  ;;  %v699_v5 = vld [vmem:[%s1817_s5 + $0x60] sm:$0xff]  ;;  %v700_v6 = vld [vmem:[%s1817_s5 + $0x68] sm:$0xff] }
  0x6b   :  { %v1371_v7 = vpack.c.bf16 %v700_v6, %v699_v5 }
  0xff   :  { %v177_v19 = vpop.f32.mrb[0].mxu0 }
 0x100   :  { %v178_v21 = vadd.f32 %v177_v19, %v85_v17  ;;  %v179_v22 = vpop.f32.mrb[1].mxu0  ;;  %v687_v17 = vld [vmem:[%s1817_s5] sm:$0xff]  ;;  %v705_v19 = vld [vmem:[%s1817_s5 + $0x90] sm:$0xff] }
 0x101   :  { %v180_v26 = vadd.f32 %v179_v22, %v89_v18  ;;  %v688_v18 = vld [vmem:[%s1817_s5 + $0x8] sm:$0xff]  ;;  %v1349_v23 = vpack.c.bf16 %v706_v20, %v705_v19  ;;  %v702_v19 = vld [vmem:[%s1817_s5 + $0x78] sm:$0xff] }
 0x102   :  { %v252_v33 = vmax.f32 %v178_v21, 0.0  ;;  %v1347_v22 = vpack.c.bf16 %v688_v18, %v687_v17  ;;  %v701_v18 = vld [vmem:[%s1817_s5 + $0x70] sm:$0xff] }
 0x103   :  { %v253_v29 = vmax.f32 %v180_v26, 0.0  ;;  %v248_v40 = vpop.f32.mrb[0].mxu1  ;;  %v1351_v26 = vpack.c.bf16 %v690_v25, %v689_v24  ;;  %v1375_v20 = vpack.c.bf16 %v702_v19, %v701_v18  ;;  %v381_v24 = vld [vmem:[%s1816_s4] sm:$0x7] }
 0x104   :  { %v1121_v41 = vpop.f32.mrb[1].mxu1  ;;  %v249_v9 = vadd.f32 %v248_v40, %v93_v61  ;;  %v1357_v40 = vpack.c.bf16 %v710_v37, %v709_v35  ;;  %v726_v61 = vld [vmem:[%s1817_s5 + $0x138] sm:$0xff]  ;;  %v394_v25 = vrot.slane %v381_v24, %v92_v51  ;;  %v882_v51 = vld [vmem:[%s1819_s7 + $0x10] sm:$0xff] }
 0x105   :  { %466 = vmatprep.mubr.f32.mxu0 %v253_v29  ;;  %608 = vmatprep.mubr.f32.mxu1 %v253_v29  ;;  %v1353_v29 = vpack.c.bf16 %v708_v28, %v707_v27  ;;  %v1359_v41 = vpack.c.bf16 %v694_v39, %v693_v38  ;;  %v390_v27 = vrot.slane %v381_v24, %v88_v16 }
 0x106   :  { %467 = vmatmul.mubr.f32.vlgmr.msra.gmra.mrb[2].mxu0 %v252_v33  ;;  %609 = vmatmul.mubr.f32.vlgmr.msra.gmra.mrb[2].mxu1 %v252_v33  ;;  %v254_v21 = vmax.f32 %v249_v9, 0.0  ;;  %v719_v33 = vld [vmem:[%s1817_s5 + $0x100] sm:$0xff]  ;;  %v728_v9 = vld [vmem:[%s1817_s5 + $0x148] sm:$0xff] }
 0x107   :  { %1281 = vmatpush1.bf16.msra.mxu0 %v1280_v30  ;;  %1332 = vmatpush3.bf16.msra.mxu1 %v1331_v31  ;;  %v691_v30 = vld [vmem:[%s1817_s5 + $0x20] sm:$0xff]  ;;  %v692_v31 = vld [vmem:[%s1817_s5 + $0x28] sm:$0xff] }
 0x108   :  { %1283 = vmatprep.subr.bf16.mxu0 %v1282_v34  ;;  %1333 = vmatprep.subr.bf16.mxu1 %v1437_v0  ;;  %v1355_v32 = vpack.c.bf16 %v692_v31, %v691_v30  ;;  %v720_v34 = vld [vmem:[%s1817_s5 + $0x108] sm:$0xff] }
 0x109   :  { %537 = vmatprep.mubr.f32.mxu0 %v1438_v1  ;;  %1142 = vmatprep.mubr.msk.f32.mxu1 %vm1439_vm0, %v1438_v1  ;;  %v1378_v36 = vpack.c.bf16 %v720_v34, %v719_v33 }
 0x10b   :  { %1285 = vmatpush1.bf16.msra.mxu0 %v1284_v42  ;;  %1335 = vmatpush3.bf16.msra.mxu1 %v1334_v43  ;;  %v721_v42 = vld [vmem:[%s1817_s5 + $0x110] sm:$0xff]  ;;  %v722_v43 = vld [vmem:[%s1817_s5 + $0x118] sm:$0xff] }
 0x10c   :  { %1287 = vmatprep.subr.bf16.mxu0 %v1286_v45  ;;  %1336 = vmatprep.subr.bf16.mxu1 %v1437_v0  ;;  %v1381_v45 = vpack.c.bf16 %v722_v43, %v721_v42  ;;  %v984_v43 = vld [vmem:[%s1818_s6] ss:$0 sm:$0xff] }
 0x10f   :  { %1289 = vmatpush1.bf16.msra.mxu0 %v1288_v52  ;;  %1338 = vmatpush3.bf16.msra.mxu1 %v1337_v53  ;;  %v724_v52 = vld [vmem:[%s1817_s5 + $0x128] sm:$0xff]  ;;  %v713_v53 = vld [vmem:[%s1817_s5 + $0xd0] sm:$0xff] }
 0x110   :  { %1291 = vmatprep.subr.bf16.mxu0 %v1290_v55  ;;  %1339 = vmatprep.subr.bf16.mxu1 %v1437_v0  ;;  %v1363_v55 = vpack.c.bf16 %v696_v48, %v695_v47  ;;  %v1384_v56 = vpack.c.bf16 %v724_v52, %v723_v50  ;;  %v1365_v57 = vpack.c.bf16 %v714_v54, %v713_v53  ;;  %v986_v48 = vld [vmem:[%s1820_s8] ss:$0 sm:$0xff]  ;;  %v966_v53 = vand.u32 127, %v82_v12 }
 0x112   :  { %vm967_vm5 = vcmp.ge.s32.totalorder %v966_v53, 7 }
 0x113   :  { %1293 = vmatpush1.bf16.msra.mxu0 %v1292_v62  ;;  %1341 = vmatpush3.bf16.msra.mxu1 %v1340_v63  ;;  %v715_v62 = vld [vmem:[%s1817_s5 + $0xe0] sm:$0xff]  ;;  %v716_v63 = vld [vmem:[%s1817_s5 + $0xe8] sm:$0xff] }
 0x114   :  { %1295 = vmatprep.subr.bf16.mxu0 %v1294_v3  ;;  %1342 = vmatprep.subr.bf16.mxu1 %v1437_v0  ;;  %v1387_v3 = vpack.c.bf16 %v726_v61, %v725_v60  ;;  %v1369_v4 = vpack.c.bf16 %v716_v63, %v715_v62 }
 0x117   :  { %1297 = vmatpush1.bf16.msra.mxu0 %v1296_v10  ;;  %1344 = vmatpush3.bf16.msra.mxu1 %v1343_v11  ;;  %v1390_v10 = vpack.c.bf16 %v728_v9, %v727_v8  ;;  %v717_v11 = vld [vmem:[%s1817_s5 + $0xf0] sm:$0xff] }
 0x118   :  { %1346 = vmatprep.subr.bf16.mxu1 %v1345_v15  ;;  %1377 = vmatprep.subr.bf16.mxu0 %v1437_v0  ;;  %v718_v15 = vld [vmem:[%s1817_s5 + $0xf8] sm:$0xff] }
 0x119   :  { %v1373_v17 = vpack.c.bf16 %v718_v15, %v717_v11 }
 0x11a   :  { %982 = vmatmul.mubr.msk.f32.vlgmr.msra.gmra.mrb[2].mxu0 %vm398_vm3, %v254_v21  ;;  %1143 = vmatmul.mubr.msk.f32.vlgmr.msra.gmra.mrb[4].mxu1 %vm398_vm3, %v254_v21 }
 0x11b   :  { %1348 = vmatpush3.bf16.msra.mxu1 %v1347_v22  ;;  %1165 = vmatprep.mubr.msk.f32.mxu0 %vm1439_vm0, %v1438_v1 }
 0x11c   :  { %1350 = vmatprep.subr.bf16.mxu1 %v1349_v23  ;;  %1379 = vmatpush3.bf16.msra.mxu0 %v1378_v36 }
 0x11d   :  { %1380 = vmatprep.subr.bf16.mxu0 %v1437_v0 }
 0x11f   :  { %1352 = vmatpush3.bf16.msra.mxu1 %v1351_v26  ;;  %v386_v26 = vrot.slane %v381_v24, %v84_v14  ;;  %v881_v14 = vld [vmem:[%s1819_s7 + $0x8] sm:$0xff] }
 0x120   :  { %1354 = vmatprep.subr.bf16.mxu1 %v1353_v29  ;;  %1382 = vmatpush3.bf16.msra.mxu0 %v1381_v45  ;;  %v1393_v16 = vpack.c.bf16 %v881_v14, %v880_v13 }
 0x121   :  { %1383 = vmatprep.subr.bf16.mxu0 %v1437_v0 }
 0x123   :  { %1356 = vmatpush3.bf16.msra.mxu1 %v1355_v32 }
 0x124   :  { %1358 = vmatprep.subr.bf16.mxu1 %v1357_v40  ;;  %1385 = vmatpush3.bf16.msra.mxu0 %v1384_v56 }
 0x125   :  { %1386 = vmatprep.subr.bf16.mxu0 %v1437_v0 }
 0x127   :  { %1360 = vmatpush3.bf16.msra.mxu1 %v1359_v41 }
 0x128   :  { %1362 = vmatprep.subr.bf16.mxu1 %v1361_v49  ;;  %1388 = vmatpush3.bf16.msra.mxu0 %v1387_v3 }
 0x129   :  { %1389 = vmatprep.subr.bf16.mxu0 %v1437_v0 }
 0x12b   :  { %1364 = vmatpush3.bf16.msra.mxu1 %v1363_v55 }
 0x12c   :  { %1366 = vmatprep.subr.bf16.mxu1 %v1365_v57  ;;  %1391 = vmatpush3.bf16.msra.mxu0 %v1390_v10 }
 0x12f   :  { %1368 = vmatpush3.bf16.msra.mxu1 %v1367_v2 }
 0x130   :  { %1370 = vmatprep.subr.bf16.mxu1 %v1369_v4 }
 0x133   :  { %1372 = vmatpush3.bf16.msra.mxu1 %v1371_v7 }
 0x134   :  { %1374 = vmatprep.subr.bf16.mxu1 %v1373_v17 }
 0x137   :  { %1376 = vmatpush3.bf16.msra.mxu1 %v1375_v20 }
 0x138   :  { %1392 = vmatprep.subr.bf16.mxu1 %v1437_v0 }
 0x1d9   :  { %v1032_v21 = vpop.f32.mrb[2].mxu1 }
 0x1da   :  { %v1033_v22 = vpop.f32.mrb[3].mxu1 }
 0x1db   :  { %v1034_v23 = vadd.f32 %v1033_v22, %v1032_v21 }
 0x1dd   :  { %v611_v28 = vadd.f32 %v1034_v23, %v394_v25 }
 0x1ed   :  { %v539_v29 = vpop.f32.mrb[2].mxu0  ;;  %v680_v30 = vpop.f32.mrb[4].mxu1 }
 0x1ee   :  { %v1398_v31 = vadd.f32 %v539_v29, %v386_v26  ;;  %v681_v32 = vadd.f32 %v680_v30, %v611_v28  ;;  %v541_v33 = vpop.f32.mrb[3].mxu0  ;;  %v1144_v34 = vpop.f32.mrb[5].mxu1 }
 0x1ef   :  { %v1399_v35 = vadd.f32 %v541_v33, %v390_v27 }
 0x1f0   :  { %v686_v36 = vmax.f32 %v681_v32, 0.0  ;;  %v684_v38 = vmax.f32 %v1398_v31, 0.0 }
 0x1f1   :  { %v685_v37 = vmax.f32 %v1399_v35, 0.0 }
 0x1f2   :  { %1166 = vmatmul.mubr.msk.f32.vlgmr.msra.gmra.mrb[4].mxu0 %vm398_vm3, %v686_v36 }
 0x1f3   :  { %803 = vmatprep.mubr.f32.mxu1 %v685_v37 }
 0x1f4   :  { %804 = vmatmul.mubr.f32.vlgmr.msra.gmra.mrb[6].mxu1 %v684_v38 }
 0x1f5   :  { %1176 = vmatprep.mubr.msk.f32.mxu1 %vm1439_vm0, %v1438_v1  ;;  %1394 = vmatpush3.bf16.msra.mxu1 %v1393_v16  ;;  %v883_v1 = vld [vmem:[%s1819_s7 + $0x18] sm:$0xff] }
 0x1f6   :  { %1395 = vmatprep.subr.bf16.mxu1 %v1437_v0  ;;  %v1396_v39 = vpack.c.bf16 %v883_v1, %v882_v51 }
 0x1f9   :  { %1397 = vmatpush3.bf16.msra.mxu1 %v1396_v39 }
 0x2c5   :  { %v875_v40 = vpop.f32.mrb[4].mxu0 }
 0x2c6   :  { %v1167_v41 = vpop.f32.mrb[5].mxu0 }
 0x2c7   :  { %v1078_v42 = vpop.f32.mrb[6].mxu1 }
 0x2c8   :  { %v1079_v44 = vpop.f32.mrb[7].mxu1 }
 0x2c9   :  { %v1080_v45 = vadd.f32 %v1079_v44, %v1078_v42 }
 0x2cb   :  { %v806_v0 = vadd.f32 %v1080_v45, %v984_v43 }
 0x2cd   :  { %v876_v46 = vadd.f32 %v875_v40, %v806_v0 }
 0x2cf   :  { %v879_v47 = vmax.f32 %v876_v46, 0.0 }
 0x2d1   :  { %1177 = vmatmul.mubr.msk.f32.vlgmr.msra.gmra.mrb[8].mxu1 %vm891_vm4, %v879_v47 }
 0x3a4   :  { %v961_v49 = vpop.f32.mrb[8].mxu1 }
 0x3a5   :  { %v962_v50 = vadd.f32 %v986_v48, %v961_v49  ;;  %v1178_v52 = vpop.f32.mrb[9].mxu1 }
 0x3a7   :  { %1408 = vtanh.f32 %v962_v50 }
 0x3b1   :  { %v1409_v54 = vpop.eup %1408 }
 0x3b2   :  { %v969_v55 = vsel %vm967_vm5, %v1409_v54, %v962_v50 }
 0x3b3   :  { %971 = vst.msk [vmem:[%s1821_s9] sm:$0xff] %vm970_vm6, %v969_v55 }
 0x3b4   :  { %976 = vsyncpa [#allocation3], 1 }

</bundles_post_ra>
